<compile_context>
chip_gen: v5e
topology: v5e:2x2
jax: 0.10.0
libtpu: 0.0.40
codegen_flags: <defaults>
</compile_context>

<pallas_src>
import jax
import jax.numpy as jnp
from jax.experimental import pallas as pl
from jax.experimental.pallas import tpu as pltpu


N_PAD = 16      # all node counts padded to this (multiple of 8 sublanes)
F_PAD = 128     # all feature dims padded to this (lane-dense, full vreg lanes)
# Set to jnp.bfloat16 for ~2x MXU throughput (keep f32 accumulate); f32 keeps
# exact parity with the PyTorch module for the correctness check below.
MXU_DTYPE = jnp.float32


# ----------------------------------------------------------------------------
# Fused kernel: layer1 (4 relations + sum) -> leaky_relu -> layer2 (4 relations
# + sum).  Everything stays in VMEM; relations are statically unrolled.
# ----------------------------------------------------------------------------
def make_node_classifier_kernel(rel_src_dst):
    """rel_src_dst: static tuple of (src_ntype_idx, dst_ntype_idx) per relation."""

    def kernel(a_ref, x_ref, w1_ref, b1_ref, w2_ref, b2_ref, h2_ref, h1_ref):
        def hetero_layer(feat_of, w_ref, b_ref, out_ref):
            # 'sum' cross-relation reducer: every dst node type starts at zero,
            # so nodes with no incoming messages stay exactly zero.
            out_ref[...] = jnp.zeros_like(out_ref)
            for r, (s, d) in enumerate(rel_src_dst):      # static unroll (R=4)
                x = feat_of(s).astype(MXU_DTYPE)          # (N_PAD, F_PAD) src feats
                w = w_ref[r].astype(MXU_DTYPE)            # (F_PAD, F_PAD)
                a = a_ref[r].astype(MXU_DTYPE)            # (N_PAD, N_PAD) row-norm adj
                # per-relation Linear:  Wh = X @ W + b
                wh = jnp.dot(x, w, preferred_element_type=jnp.float32) + b_ref[r]
                # copy_u('Wh') + mean over incoming edges == A_norm @ Wh,
                # summed into the destination node type.
                out_ref[d] = out_ref[d] + jnp.dot(
                    a, wh.astype(MXU_DTYPE), preferred_element_type=jnp.float32)

        # ---- layer 1 (encoder): embeddings -> hidden, into VMEM scratch
        hetero_layer(lambda s: x_ref[s], w1_ref, b1_ref, h1_ref)
        # ---- leaky_relu (f32 elementwise on the VPU, slope 0.01)
        h = h1_ref[...]
        h1_ref[...] = jnp.where(h >= 0, h, jnp.float32(0.01) * h)
        # ---- layer 2 (decoder): hidden -> out
        hetero_layer(lambda s: h1_ref[s], w2_ref, b2_ref, h2_ref)

    return kernel


def node_classifier_forward(packed, rel_src_dst, num_ntypes, chem_idx,
                            n_chem, out_size):
    a, x, w1, b1, w2, b2 = packed
    h2 = pl.pallas_call(
        make_node_classifier_kernel(rel_src_dst),
        out_shape=jax.ShapeDtypeStruct((num_ntypes, N_PAD, F_PAD), jnp.float32),
        in_specs=[pl.BlockSpec(memory_space=pltpu.MemorySpace.VMEM)] * 6,
        out_specs=pl.BlockSpec(memory_space=pltpu.MemorySpace.VMEM),
        scratch_shapes=[pltpu.VMEM((num_ntypes, N_PAD, F_PAD), jnp.float32)],
    )(a, x, w1, b1, w2, b2)
    # The module returns h_dict['chemical']; un-pad to the real shape.
    return h2[chem_idx, :n_chem, :out_size]


# ----------------------------------------------------------------------------
# One-time packing of the graph + parameters into padded, stacked tensors.
# ----------------------------------------------------------------------------
def pack_inputs(graph, params):
    ntypes = graph["ntypes"]
    cet = graph["canonical_etypes"]
    etypes = [et for (_, et, _) in cet]
    nt_idx = {nt: i for i, nt in enumerate(ntypes)}
    rel_src_dst = tuple((nt_idx[s], nt_idx[d]) for (s, _, d) in cet)

    def pad2(x, rows, cols):
        return jnp.zeros((rows, cols), jnp.float32).at[
            : x.shape[0], : x.shape[1]].set(x)

    a = jnp.stack([pad2(graph["adj"][et], N_PAD, N_PAD) for et in etypes])
    x = jnp.stack([pad2(params["embed"][nt], N_PAD, F_PAD) for nt in ntypes])
    w1 = jnp.stack([pad2(params["w1"][et], F_PAD, F_PAD) for et in etypes])
    b1 = jnp.stack([pad2(params["b1"][et][None, :], 1, F_PAD) for et in etypes])
    w2 = jnp.stack([pad2(params["w2"][et], F_PAD, F_PAD) for et in etypes])
    b2 = jnp.stack([pad2(params["b2"][et][None, :], 1, F_PAD) for et in etypes])
    return rel_src_dst, (a, x, w1, b1, w2, b2)


# ----------------------------------------------------------------------------
# Pure-JAX reference (unpadded f32) for a correctness check.
# ----------------------------------------------------------------------------
def _reference_forward(params, graph):
    def layer(feat, w, b, out_size):
        out = {nt: jnp.zeros((graph["num_nodes"][nt], out_size), jnp.float32)
               for nt in graph["ntypes"]}
        for (src, et, dst) in graph["canonical_etypes"]:
            wh = feat[src] @ w[et] + b[et]
            out[dst] = out[dst] + graph["adj"][et] @ wh
        return out

    h = layer(params["embed"], params["w1"], params["b1"], params["hidden_size"])
    h = {k: jnp.where(v >= 0, v, 0.01 * v) for k, v in h.items()}
    h = layer(h, params["w2"], params["b2"], params["out_size"])
    return h["chemical"]


# ----------------------------------------------------------------------------
# Deterministic synthetic heterogeneous graph + parameters
# ----------------------------------------------------------------------------
def build_graph_and_params():
    key = jax.random.PRNGKey(0)

    ntypes = ["chemical", "disease", "gene"]
    num_nodes = {"chemical": 16, "disease": 12, "gene": 10}
    node_sizes = {"chemical": 8, "disease": 6, "gene": 4}
    canonical_etypes = [
        ("chemical", "chemical_disease", "disease"),
        ("disease", "disease_chemical", "chemical"),
        ("gene", "gene_chemical", "chemical"),
        ("chemical", "chemical_gene", "gene"),
    ]
    edge_input_sizes = {et: node_sizes[src] for (src, et, dst) in canonical_etypes}
    hidden_size, out_size = 16, 8
    num_edges = 40

    # Random edges -> dense row-normalized adjacency (mean over incoming edges).
    adj = {}
    for (src, et, dst) in canonical_etypes:
        key, k1, k2 = jax.random.split(key, 3)
        s = jax.random.randint(k1, (num_edges,), 0, num_nodes[src])
        d = jax.random.randint(k2, (num_edges,), 0, num_nodes[dst])
        a = jnp.zeros((num_nodes[dst], num_nodes[src]), jnp.float32).at[d, s].add(1.0)
        deg = a.sum(axis=1, keepdims=True)
        adj[et] = jnp.where(deg > 0, a / jnp.maximum(deg, 1.0), 0.0)

    def xavier(k, shape):
        bound = (6.0 / (shape[0] + shape[1])) ** 0.5
        return jax.random.uniform(k, shape, jnp.float32, -bound, bound)

    # Node embeddings (xavier_uniform like the PyTorch module).
    embed = {}
    for nt in ntypes:
        key, k = jax.random.split(key)
        embed[nt] = xavier(k, (num_nodes[nt], node_sizes[nt]))

    # Per-relation Linear weights for the two HeteroRGCN layers.
    w1, b1, w2, b2 = {}, {}, {}, {}
    for (src, et, dst) in canonical_etypes:
        key, k1, k2, k3, k4 = jax.random.split(key, 5)
        w1[et] = xavier(k1, (edge_input_sizes[et], hidden_size))
        b1[et] = 0.01 * jax.random.normal(k2, (hidden_size,), jnp.float32)
        w2[et] = xavier(k3, (hidden_size, out_size))
        b2[et] = 0.01 * jax.random.normal(k4, (out_size,), jnp.float32)

    graph = {"ntypes": ntypes, "num_nodes": num_nodes,
             "canonical_etypes": canonical_etypes, "adj": adj}
    params = {"embed": embed, "w1": w1, "b1": b1, "w2": w2, "b2": b2,
              "hidden_size": hidden_size, "out_size": out_size}
    return graph, params


if __name__ == "__main__":
    graph, params = build_graph_and_params()
    rel_src_dst, packed = pack_inputs(graph, params)
    chem_idx = graph["ntypes"].index("chemical")

    out = node_classifier_forward(packed, rel_src_dst, len(graph["ntypes"]),
                                  chem_idx, graph["num_nodes"]["chemical"],
                                  params["out_size"])
    out = jax.block_until_ready(out)

    ref = _reference_forward(params, graph)
    assert out.shape == (graph["num_nodes"]["chemical"], params["out_size"])
    # With MXU_DTYPE = bfloat16, loosen to atol=rtol=2e-2.
    assert jnp.allclose(out, ref, atol=2e-4, rtol=2e-4), \
        float(jnp.abs(out - ref).max())

    print("KERNEL_OK")
</pallas_src>

<mosaic_0001>
module attributes {stable_mosaic.version = 11 : i64} {
  func.func @kernel(%arg0: memref<4x16x16xf32, #tpu.memory_space<vmem>>, %arg1: memref<3x16x128xf32, #tpu.memory_space<vmem>>, %arg2: memref<4x128x128xf32, #tpu.memory_space<vmem>>, %arg3: memref<4x1x128xf32, #tpu.memory_space<vmem>>, %arg4: memref<4x128x128xf32, #tpu.memory_space<vmem>>, %arg5: memref<4x1x128xf32, #tpu.memory_space<vmem>>, %arg6: memref<3x16x128xf32, #tpu.memory_space<vmem>>, %arg7: memref<3x16x128xf32, #tpu.memory_space<vmem>>) attributes {dimension_semantics = [], scalar_prefetch = 0 : i64, scratch_operands = 1 : i64, tpu.core_type = #tpu.core_type<tc>} {
    %cst = arith.constant 0.000000e+00 : f32
    %0 = vector.broadcast %cst : f32 to vector<3x16x128xf32>
    %c0 = arith.constant 0 : index
    %c0_0 = arith.constant 0 : index
    %c0_1 = arith.constant 0 : index
    %1 = vector.load %arg7[%c0, %c0_0, %c0_1] : memref<3x16x128xf32, #tpu.memory_space<vmem>>, vector<3x16x128xf32>
    tpu.vector_store %arg7[%c0, %c0_0, %c0_1], %0 {strides = array<i32>} : memref<3x16x128xf32, #tpu.memory_space<vmem>>, vector<3x16x128xf32>,
    %c0_2 = arith.constant 0 : index
    %c0_3 = arith.constant 0 : index
    %c0_4 = arith.constant 0 : index
    %2 = vector.load %arg1[%c0_2, %c0_3, %c0_4] : memref<3x16x128xf32, #tpu.memory_space<vmem>>, vector<1x16x128xf32>
    %3 = vector.shape_cast %2 : vector<1x16x128xf32> to vector<16x128xf32>
    %c0_5 = arith.constant 0 : index
    %c0_6 = arith.constant 0 : index
    %c0_7 = arith.constant 0 : index
    %4 = vector.load %arg2[%c0_5, %c0_6, %c0_7] : memref<4x128x128xf32, #tpu.memory_space<vmem>>, vector<1x128x128xf32>
    %5 = vector.shape_cast %4 : vector<1x128x128xf32> to vector<128x128xf32>
    %c0_8 = arith.constant 0 : index
    %c0_9 = arith.constant 0 : index
    %c0_10 = arith.constant 0 : index
    %6 = vector.load %arg0[%c0_8, %c0_9, %c0_10] : memref<4x16x16xf32, #tpu.memory_space<vmem>>, vector<1x16x16xf32>
    %7 = vector.shape_cast %6 : vector<1x16x16xf32> to vector<16x16xf32>
    %cst_11 = arith.constant dense<0.000000e+00> : vector<16x128xf32>
    %8 = tpu.matmul %3, %5, %cst_11 {dimension_numbers = #tpu.dot_dimension_numbers<[1], [0], [0], [1], [0, 0, 1, 1], [], []>} : vector<16x128xf32>, vector<128x128xf32>, vector<16x128xf32> -> vector<16x128xf32>
    %c0_12 = arith.constant 0 : index
    %c0_13 = arith.constant 0 : index
    %c0_14 = arith.constant 0 : index
    %9 = vector.load %arg3[%c0_12, %c0_13, %c0_14] : memref<4x1x128xf32, #tpu.memory_space<vmem>>, vector<1x1x128xf32>
    %10 = vector.shape_cast %9 : vector<1x1x128xf32> to vector<1x128xf32>
    %11 = vector.broadcast %10 : vector<1x128xf32> to vector<16x128xf32>
    %12 = arith.addf %8, %11 : vector<16x128xf32>
    %c1 = arith.constant 1 : index
    %c0_15 = arith.constant 0 : index
    %c0_16 = arith.constant 0 : index
    %13 = vector.load %arg7[%c1, %c0_15, %c0_16] : memref<3x16x128xf32, #tpu.memory_space<vmem>>, vector<1x16x128xf32>
    %14 = vector.shape_cast %13 : vector<1x16x128xf32> to vector<16x128xf32>
    %cst_17 = arith.constant dense<0.000000e+00> : vector<16x128xf32>
    %15 = tpu.matmul %7, %12, %cst_17 {dimension_numbers = #tpu.dot_dimension_numbers<[1], [0], [0], [1], [0, 0, 1, 1], [], []>} : vector<16x16xf32>, vector<16x128xf32>, vector<16x128xf32> -> vector<16x128xf32>
    %16 = arith.addf %14, %15 : vector<16x128xf32>
    %c1_18 = arith.constant 1 : index
    %c0_19 = arith.constant 0 : index
    %c0_20 = arith.constant 0 : index
    %17 = vector.load %arg7[%c1_18, %c0_19, %c0_20] : memref<3x16x128xf32, #tpu.memory_space<vmem>>, vector<1x16x128xf32>
    %18 = vector.shape_cast %17 : vector<1x16x128xf32> to vector<16x128xf32>
    %19 = vector.shape_cast %16 : vector<16x128xf32> to vector<1x16x128xf32>
    tpu.vector_store %arg7[%c1_18, %c0_19, %c0_20], %19 {strides = array<i32>} : memref<3x16x128xf32, #tpu.memory_space<vmem>>, vector<1x16x128xf32>,
    %c1_21 = arith.constant 1 : index
    %c0_22 = arith.constant 0 : index
    %c0_23 = arith.constant 0 : index
    %20 = vector.load %arg1[%c1_21, %c0_22, %c0_23] : memref<3x16x128xf32, #tpu.memory_space<vmem>>, vector<1x16x128xf32>
    %21 = vector.shape_cast %20 : vector<1x16x128xf32> to vector<16x128xf32>
    %c1_24 = arith.constant 1 : index
    %c0_25 = arith.constant 0 : index
    %c0_26 = arith.constant 0 : index
    %22 = vector.load %arg2[%c1_24, %c0_25, %c0_26] : memref<4x128x128xf32, #tpu.memory_space<vmem>>, vector<1x128x128xf32>
    %23 = vector.shape_cast %22 : vector<1x128x128xf32> to vector<128x128xf32>
    %c1_27 = arith.constant 1 : index
    %c0_28 = arith.constant 0 : index
    %c0_29 = arith.constant 0 : index
    %24 = vector.load %arg0[%c1_27, %c0_28, %c0_29] : memref<4x16x16xf32, #tpu.memory_space<vmem>>, vector<1x16x16xf32>
    %25 = vector.shape_cast %24 : vector<1x16x16xf32> to vector<16x16xf32>
    %cst_30 = arith.constant dense<0.000000e+00> : vector<16x128xf32>
    %26 = tpu.matmul %21, %23, %cst_30 {dimension_numbers = #tpu.dot_dimension_numbers<[1], [0], [0], [1], [0, 0, 1, 1], [], []>} : vector<16x128xf32>, vector<128x128xf32>, vector<16x128xf32> -> vector<16x128xf32>
    %c1_31 = arith.constant 1 : index
    %c0_32 = arith.constant 0 : index
    %c0_33 = arith.constant 0 : index
    %27 = vector.load %arg3[%c1_31, %c0_32, %c0_33] : memref<4x1x128xf32, #tpu.memory_space<vmem>>, vector<1x1x128xf32>
    %28 = vector.shape_cast %27 : vector<1x1x128xf32> to vector<1x128xf32>
    %29 = vector.broadcast %28 : vector<1x128xf32> to vector<16x128xf32>
    %30 = arith.addf %26, %29 : vector<16x128xf32>
    %c0_34 = arith.constant 0 : index
    %c0_35 = arith.constant 0 : index
    %c0_36 = arith.constant 0 : index
    %31 = vector.load %arg7[%c0_34, %c0_35, %c0_36] : memref<3x16x128xf32, #tpu.memory_space<vmem>>, vector<1x16x128xf32>
    %32 = vector.shape_cast %31 : vector<1x16x128xf32> to vector<16x128xf32>
    %cst_37 = arith.constant dense<0.000000e+00> : vector<16x128xf32>
    %33 = tpu.matmul %25, %30, %cst_37 {dimension_numbers = #tpu.dot_dimension_numbers<[1], [0], [0], [1], [0, 0, 1, 1], [], []>} : vector<16x16xf32>, vector<16x128xf32>, vector<16x128xf32> -> vector<16x128xf32>
    %34 = arith.addf %32, %33 : vector<16x128xf32>
    %c0_38 = arith.constant 0 : index
    %c0_39 = arith.constant 0 : index
    %c0_40 = arith.constant 0 : index
    %35 = vector.load %arg7[%c0_38, %c0_39, %c0_40] : memref<3x16x128xf32, #tpu.memory_space<vmem>>, vector<1x16x128xf32>
    %36 = vector.shape_cast %35 : vector<1x16x128xf32> to vector<16x128xf32>
    %37 = vector.shape_cast %34 : vector<16x128xf32> to vector<1x16x128xf32>
    tpu.vector_store %arg7[%c0_38, %c0_39, %c0_40], %37 {strides = array<i32>} : memref<3x16x128xf32, #tpu.memory_space<vmem>>, vector<1x16x128xf32>,
    %c2 = arith.constant 2 : index
    %c0_41 = arith.constant 0 : index
    %c0_42 = arith.constant 0 : index
    %38 = vector.load %arg1[%c2, %c0_41, %c0_42] : memref<3x16x128xf32, #tpu.memory_space<vmem>>, vector<1x16x128xf32>
    %39 = vector.shape_cast %38 : vector<1x16x128xf32> to vector<16x128xf32>
    %c2_43 = arith.constant 2 : index
    %c0_44 = arith.constant 0 : index
    %c0_45 = arith.constant 0 : index
    %40 = vector.load %arg2[%c2_43, %c0_44, %c0_45] : memref<4x128x128xf32, #tpu.memory_space<vmem>>, vector<1x128x128xf32>
    %41 = vector.shape_cast %40 : vector<1x128x128xf32> to vector<128x128xf32>
    %c2_46 = arith.constant 2 : index
    %c0_47 = arith.constant 0 : index
    %c0_48 = arith.constant 0 : index
    %42 = vector.load %arg0[%c2_46, %c0_47, %c0_48] : memref<4x16x16xf32, #tpu.memory_space<vmem>>, vector<1x16x16xf32>
    %43 = vector.shape_cast %42 : vector<1x16x16xf32> to vector<16x16xf32>
    %cst_49 = arith.constant dense<0.000000e+00> : vector<16x128xf32>
    %44 = tpu.matmul %39, %41, %cst_49 {dimension_numbers = #tpu.dot_dimension_numbers<[1], [0], [0], [1], [0, 0, 1, 1], [], []>} : vector<16x128xf32>, vector<128x128xf32>, vector<16x128xf32> -> vector<16x128xf32>
    %c2_50 = arith.constant 2 : index
    %c0_51 = arith.constant 0 : index
    %c0_52 = arith.constant 0 : index
    %45 = vector.load %arg3[%c2_50, %c0_51, %c0_52] : memref<4x1x128xf32, #tpu.memory_space<vmem>>, vector<1x1x128xf32>
    %46 = vector.shape_cast %45 : vector<1x1x128xf32> to vector<1x128xf32>
    %47 = vector.broadcast %46 : vector<1x128xf32> to vector<16x128xf32>
    %48 = arith.addf %44, %47 : vector<16x128xf32>
    %c0_53 = arith.constant 0 : index
    %c0_54 = arith.constant 0 : index
    %c0_55 = arith.constant 0 : index
    %49 = vector.load %arg7[%c0_53, %c0_54, %c0_55] : memref<3x16x128xf32, #tpu.memory_space<vmem>>, vector<1x16x128xf32>
    %50 = vector.shape_cast %49 : vector<1x16x128xf32> to vector<16x128xf32>
    %cst_56 = arith.constant dense<0.000000e+00> : vector<16x128xf32>
    %51 = tpu.matmul %43, %48, %cst_56 {dimension_numbers = #tpu.dot_dimension_numbers<[1], [0], [0], [1], [0, 0, 1, 1], [], []>} : vector<16x16xf32>, vector<16x128xf32>, vector<16x128xf32> -> vector<16x128xf32>
    %52 = arith.addf %50, %51 : vector<16x128xf32>
    %c0_57 = arith.constant 0 : index
    %c0_58 = arith.constant 0 : index
    %c0_59 = arith.constant 0 : index
    %53 = vector.load %arg7[%c0_57, %c0_58, %c0_59] : memref<3x16x128xf32, #tpu.memory_space<vmem>>, vector<1x16x128xf32>
    %54 = vector.shape_cast %53 : vector<1x16x128xf32> to vector<16x128xf32>
    %55 = vector.shape_cast %52 : vector<16x128xf32> to vector<1x16x128xf32>
    tpu.vector_store %arg7[%c0_57, %c0_58, %c0_59], %55 {strides = array<i32>} : memref<3x16x128xf32, #tpu.memory_space<vmem>>, vector<1x16x128xf32>,
    %c0_60 = arith.constant 0 : index
    %c0_61 = arith.constant 0 : index
    %c0_62 = arith.constant 0 : index
    %56 = vector.load %arg1[%c0_60, %c0_61, %c0_62] : memref<3x16x128xf32, #tpu.memory_space<vmem>>, vector<1x16x128xf32>
    %57 = vector.shape_cast %56 : vector<1x16x128xf32> to vector<16x128xf32>
    %c3 = arith.constant 3 : index
    %c0_63 = arith.constant 0 : index
    %c0_64 = arith.constant 0 : index
    %58 = vector.load %arg2[%c3, %c0_63, %c0_64] : memref<4x128x128xf32, #tpu.memory_space<vmem>>, vector<1x128x128xf32>
    %59 = vector.shape_cast %58 : vector<1x128x128xf32> to vector<128x128xf32>
    %c3_65 = arith.constant 3 : index
    %c0_66 = arith.constant 0 : index
    %c0_67 = arith.constant 0 : index
    %60 = vector.load %arg0[%c3_65, %c0_66, %c0_67] : memref<4x16x16xf32, #tpu.memory_space<vmem>>, vector<1x16x16xf32>
    %61 = vector.shape_cast %60 : vector<1x16x16xf32> to vector<16x16xf32>
    %cst_68 = arith.constant dense<0.000000e+00> : vector<16x128xf32>
    %62 = tpu.matmul %57, %59, %cst_68 {dimension_numbers = #tpu.dot_dimension_numbers<[1], [0], [0], [1], [0, 0, 1, 1], [], []>} : vector<16x128xf32>, vector<128x128xf32>, vector<16x128xf32> -> vector<16x128xf32>
    %c3_69 = arith.constant 3 : index
    %c0_70 = arith.constant 0 : index
    %c0_71 = arith.constant 0 : index
    %63 = vector.load %arg3[%c3_69, %c0_70, %c0_71] : memref<4x1x128xf32, #tpu.memory_space<vmem>>, vector<1x1x128xf32>
    %64 = vector.shape_cast %63 : vector<1x1x128xf32> to vector<1x128xf32>
    %65 = vector.broadcast %64 : vector<1x128xf32> to vector<16x128xf32>
    %66 = arith.addf %62, %65 : vector<16x128xf32>
    %c2_72 = arith.constant 2 : index
    %c0_73 = arith.constant 0 : index
    %c0_74 = arith.constant 0 : index
    %67 = vector.load %arg7[%c2_72, %c0_73, %c0_74] : memref<3x16x128xf32, #tpu.memory_space<vmem>>, vector<1x16x128xf32>
    %68 = vector.shape_cast %67 : vector<1x16x128xf32> to vector<16x128xf32>
    %cst_75 = arith.constant dense<0.000000e+00> : vector<16x128xf32>
    %69 = tpu.matmul %61, %66, %cst_75 {dimension_numbers = #tpu.dot_dimension_numbers<[1], [0], [0], [1], [0, 0, 1, 1], [], []>} : vector<16x16xf32>, vector<16x128xf32>, vector<16x128xf32> -> vector<16x128xf32>
    %70 = arith.addf %68, %69 : vector<16x128xf32>
    %c2_76 = arith.constant 2 : index
    %c0_77 = arith.constant 0 : index
    %c0_78 = arith.constant 0 : index
    %71 = vector.load %arg7[%c2_76, %c0_77, %c0_78] : memref<3x16x128xf32, #tpu.memory_space<vmem>>, vector<1x16x128xf32>
    %72 = vector.shape_cast %71 : vector<1x16x128xf32> to vector<16x128xf32>
    %73 = vector.shape_cast %70 : vector<16x128xf32> to vector<1x16x128xf32>
    tpu.vector_store %arg7[%c2_76, %c0_77, %c0_78], %73 {strides = array<i32>} : memref<3x16x128xf32, #tpu.memory_space<vmem>>, vector<1x16x128xf32>,
    %c0_79 = arith.constant 0 : index
    %c0_80 = arith.constant 0 : index
    %c0_81 = arith.constant 0 : index
    %74 = vector.load %arg7[%c0_79, %c0_80, %c0_81] : memref<3x16x128xf32, #tpu.memory_space<vmem>>, vector<3x16x128xf32>
    %cst_82 = arith.constant 0.000000e+00 : f32
    %75 = vector.broadcast %cst_82 : f32 to vector<3x16x128xf32>
    %76 = arith.cmpf oge, %74, %75 : vector<3x16x128xf32>
    %cst_83 = arith.constant 0.00999999977 : f32
    %77 = vector.broadcast %cst_83 : f32 to vector<3x16x128xf32>
    %78 = arith.mulf %77, %74 : vector<3x16x128xf32>
    %79 = arith.select %76, %74, %78 : vector<3x16x128xi1>, vector<3x16x128xf32>
    %c0_84 = arith.constant 0 : index
    %c0_85 = arith.constant 0 : index
    %c0_86 = arith.constant 0 : index
    %80 = vector.load %arg7[%c0_84, %c0_85, %c0_86] : memref<3x16x128xf32, #tpu.memory_space<vmem>>, vector<3x16x128xf32>
    tpu.vector_store %arg7[%c0_84, %c0_85, %c0_86], %79 {strides = array<i32>} : memref<3x16x128xf32, #tpu.memory_space<vmem>>, vector<3x16x128xf32>,
    %cst_87 = arith.constant 0.000000e+00 : f32
    %81 = vector.broadcast %cst_87 : f32 to vector<3x16x128xf32>
    %c0_88 = arith.constant 0 : index
    %c0_89 = arith.constant 0 : index
    %c0_90 = arith.constant 0 : index
    %82 = vector.load %arg6[%c0_88, %c0_89, %c0_90] : memref<3x16x128xf32, #tpu.memory_space<vmem>>, vector<3x16x128xf32>
    tpu.vector_store %arg6[%c0_88, %c0_89, %c0_90], %81 {strides = array<i32>} : memref<3x16x128xf32, #tpu.memory_space<vmem>>, vector<3x16x128xf32>,
    %c0_91 = arith.constant 0 : index
    %c0_92 = arith.constant 0 : index
    %c0_93 = arith.constant 0 : index
    %83 = vector.load %arg7[%c0_91, %c0_92, %c0_93] : memref<3x16x128xf32, #tpu.memory_space<vmem>>, vector<1x16x128xf32>
    %84 = vector.shape_cast %83 : vector<1x16x128xf32> to vector<16x128xf32>
    %c0_94 = arith.constant 0 : index
    %c0_95 = arith.constant 0 : index
    %c0_96 = arith.constant 0 : index
    %85 = vector.load %arg4[%c0_94, %c0_95, %c0_96] : memref<4x128x128xf32, #tpu.memory_space<vmem>>, vector<1x128x128xf32>
    %86 = vector.shape_cast %85 : vector<1x128x128xf32> to vector<128x128xf32>
    %c0_97 = arith.constant 0 : index
    %c0_98 = arith.constant 0 : index
    %c0_99 = arith.constant 0 : index
    %87 = vector.load %arg0[%c0_97, %c0_98, %c0_99] : memref<4x16x16xf32, #tpu.memory_space<vmem>>, vector<1x16x16xf32>
    %88 = vector.shape_cast %87 : vector<1x16x16xf32> to vector<16x16xf32>
    %cst_100 = arith.constant dense<0.000000e+00> : vector<16x128xf32>
    %89 = tpu.matmul %84, %86, %cst_100 {dimension_numbers = #tpu.dot_dimension_numbers<[1], [0], [0], [1], [0, 0, 1, 1], [], []>} : vector<16x128xf32>, vector<128x128xf32>, vector<16x128xf32> -> vector<16x128xf32>
    %c0_101 = arith.constant 0 : index
    %c0_102 = arith.constant 0 : index
    %c0_103 = arith.constant 0 : index
    %90 = vector.load %arg5[%c0_101, %c0_102, %c0_103] : memref<4x1x128xf32, #tpu.memory_space<vmem>>, vector<1x1x128xf32>
    %91 = vector.shape_cast %90 : vector<1x1x128xf32> to vector<1x128xf32>
    %92 = vector.broadcast %91 : vector<1x128xf32> to vector<16x128xf32>
    %93 = arith.addf %89, %92 : vector<16x128xf32>
    %c1_104 = arith.constant 1 : index
    %c0_105 = arith.constant 0 : index
    %c0_106 = arith.constant 0 : index
    %94 = vector.load %arg6[%c1_104, %c0_105, %c0_106] : memref<3x16x128xf32, #tpu.memory_space<vmem>>, vector<1x16x128xf32>
    %95 = vector.shape_cast %94 : vector<1x16x128xf32> to vector<16x128xf32>
    %cst_107 = arith.constant dense<0.000000e+00> : vector<16x128xf32>
    %96 = tpu.matmul %88, %93, %cst_107 {dimension_numbers = #tpu.dot_dimension_numbers<[1], [0], [0], [1], [0, 0, 1, 1], [], []>} : vector<16x16xf32>, vector<16x128xf32>, vector<16x128xf32> -> vector<16x128xf32>
    %97 = arith.addf %95, %96 : vector<16x128xf32>
    %c1_108 = arith.constant 1 : index
    %c0_109 = arith.constant 0 : index
    %c0_110 = arith.constant 0 : index
    %98 = vector.load %arg6[%c1_108, %c0_109, %c0_110] : memref<3x16x128xf32, #tpu.memory_space<vmem>>, vector<1x16x128xf32>
    %99 = vector.shape_cast %98 : vector<1x16x128xf32> to vector<16x128xf32>
    %100 = vector.shape_cast %97 : vector<16x128xf32> to vector<1x16x128xf32>
    tpu.vector_store %arg6[%c1_108, %c0_109, %c0_110], %100 {strides = array<i32>} : memref<3x16x128xf32, #tpu.memory_space<vmem>>, vector<1x16x128xf32>,
    %c1_111 = arith.constant 1 : index
    %c0_112 = arith.constant 0 : index
    %c0_113 = arith.constant 0 : index
    %101 = vector.load %arg7[%c1_111, %c0_112, %c0_113] : memref<3x16x128xf32, #tpu.memory_space<vmem>>, vector<1x16x128xf32>
    %102 = vector.shape_cast %101 : vector<1x16x128xf32> to vector<16x128xf32>
    %c1_114 = arith.constant 1 : index
    %c0_115 = arith.constant 0 : index
    %c0_116 = arith.constant 0 : index
    %103 = vector.load %arg4[%c1_114, %c0_115, %c0_116] : memref<4x128x128xf32, #tpu.memory_space<vmem>>, vector<1x128x128xf32>
    %104 = vector.shape_cast %103 : vector<1x128x128xf32> to vector<128x128xf32>
    %c1_117 = arith.constant 1 : index
    %c0_118 = arith.constant 0 : index
    %c0_119 = arith.constant 0 : index
    %105 = vector.load %arg0[%c1_117, %c0_118, %c0_119] : memref<4x16x16xf32, #tpu.memory_space<vmem>>, vector<1x16x16xf32>
    %106 = vector.shape_cast %105 : vector<1x16x16xf32> to vector<16x16xf32>
    %cst_120 = arith.constant dense<0.000000e+00> : vector<16x128xf32>
    %107 = tpu.matmul %102, %104, %cst_120 {dimension_numbers = #tpu.dot_dimension_numbers<[1], [0], [0], [1], [0, 0, 1, 1], [], []>} : vector<16x128xf32>, vector<128x128xf32>, vector<16x128xf32> -> vector<16x128xf32>
    %c1_121 = arith.constant 1 : index
    %c0_122 = arith.constant 0 : index
    %c0_123 = arith.constant 0 : index
    %108 = vector.load %arg5[%c1_121, %c0_122, %c0_123] : memref<4x1x128xf32, #tpu.memory_space<vmem>>, vector<1x1x128xf32>
    %109 = vector.shape_cast %108 : vector<1x1x128xf32> to vector<1x128xf32>
    %110 = vector.broadcast %109 : vector<1x128xf32> to vector<16x128xf32>
    %111 = arith.addf %107, %110 : vector<16x128xf32>
    %c0_124 = arith.constant 0 : index
    %c0_125 = arith.constant 0 : index
    %c0_126 = arith.constant 0 : index
    %112 = vector.load %arg6[%c0_124, %c0_125, %c0_126] : memref<3x16x128xf32, #tpu.memory_space<vmem>>, vector<1x16x128xf32>
    %113 = vector.shape_cast %112 : vector<1x16x128xf32> to vector<16x128xf32>
    %cst_127 = arith.constant dense<0.000000e+00> : vector<16x128xf32>
    %114 = tpu.matmul %106, %111, %cst_127 {dimension_numbers = #tpu.dot_dimension_numbers<[1], [0], [0], [1], [0, 0, 1, 1], [], []>} : vector<16x16xf32>, vector<16x128xf32>, vector<16x128xf32> -> vector<16x128xf32>
    %115 = arith.addf %113, %114 : vector<16x128xf32>
    %c0_128 = arith.constant 0 : index
    %c0_129 = arith.constant 0 : index
    %c0_130 = arith.constant 0 : index
    %116 = vector.load %arg6[%c0_128, %c0_129, %c0_130] : memref<3x16x128xf32, #tpu.memory_space<vmem>>, vector<1x16x128xf32>
    %117 = vector.shape_cast %116 : vector<1x16x128xf32> to vector<16x128xf32>
    %118 = vector.shape_cast %115 : vector<16x128xf32> to vector<1x16x128xf32>
    tpu.vector_store %arg6[%c0_128, %c0_129, %c0_130], %118 {strides = array<i32>} : memref<3x16x128xf32, #tpu.memory_space<vmem>>, vector<1x16x128xf32>,
    %c2_131 = arith.constant 2 : index
    %c0_132 = arith.constant 0 : index
    %c0_133 = arith.constant 0 : index
    %119 = vector.load %arg7[%c2_131, %c0_132, %c0_133] : memref<3x16x128xf32, #tpu.memory_space<vmem>>, vector<1x16x128xf32>
    %120 = vector.shape_cast %119 : vector<1x16x128xf32> to vector<16x128xf32>
    %c2_134 = arith.constant 2 : index
    %c0_135 = arith.constant 0 : index
    %c0_136 = arith.constant 0 : index
    %121 = vector.load %arg4[%c2_134, %c0_135, %c0_136] : memref<4x128x128xf32, #tpu.memory_space<vmem>>, vector<1x128x128xf32>
    %122 = vector.shape_cast %121 : vector<1x128x128xf32> to vector<128x128xf32>
    %c2_137 = arith.constant 2 : index
    %c0_138 = arith.constant 0 : index
    %c0_139 = arith.constant 0 : index
    %123 = vector.load %arg0[%c2_137, %c0_138, %c0_139] : memref<4x16x16xf32, #tpu.memory_space<vmem>>, vector<1x16x16xf32>
    %124 = vector.shape_cast %123 : vector<1x16x16xf32> to vector<16x16xf32>
    %cst_140 = arith.constant dense<0.000000e+00> : vector<16x128xf32>
    %125 = tpu.matmul %120, %122, %cst_140 {dimension_numbers = #tpu.dot_dimension_numbers<[1], [0], [0], [1], [0, 0, 1, 1], [], []>} : vector<16x128xf32>, vector<128x128xf32>, vector<16x128xf32> -> vector<16x128xf32>
    %c2_141 = arith.constant 2 : index
    %c0_142 = arith.constant 0 : index
    %c0_143 = arith.constant 0 : index
    %126 = vector.load %arg5[%c2_141, %c0_142, %c0_143] : memref<4x1x128xf32, #tpu.memory_space<vmem>>, vector<1x1x128xf32>
    %127 = vector.shape_cast %126 : vector<1x1x128xf32> to vector<1x128xf32>
    %128 = vector.broadcast %127 : vector<1x128xf32> to vector<16x128xf32>
    %129 = arith.addf %125, %128 : vector<16x128xf32>
    %c0_144 = arith.constant 0 : index
    %c0_145 = arith.constant 0 : index
    %c0_146 = arith.constant 0 : index
    %130 = vector.load %arg6[%c0_144, %c0_145, %c0_146] : memref<3x16x128xf32, #tpu.memory_space<vmem>>, vector<1x16x128xf32>
    %131 = vector.shape_cast %130 : vector<1x16x128xf32> to vector<16x128xf32>
    %cst_147 = arith.constant dense<0.000000e+00> : vector<16x128xf32>
    %132 = tpu.matmul %124, %129, %cst_147 {dimension_numbers = #tpu.dot_dimension_numbers<[1], [0], [0], [1], [0, 0, 1, 1], [], []>} : vector<16x16xf32>, vector<16x128xf32>, vector<16x128xf32> -> vector<16x128xf32>
    %133 = arith.addf %131, %132 : vector<16x128xf32>
    %c0_148 = arith.constant 0 : index
    %c0_149 = arith.constant 0 : index
    %c0_150 = arith.constant 0 : index
    %134 = vector.load %arg6[%c0_148, %c0_149, %c0_150] : memref<3x16x128xf32, #tpu.memory_space<vmem>>, vector<1x16x128xf32>
    %135 = vector.shape_cast %134 : vector<1x16x128xf32> to vector<16x128xf32>
    %136 = vector.shape_cast %133 : vector<16x128xf32> to vector<1x16x128xf32>
    tpu.vector_store %arg6[%c0_148, %c0_149, %c0_150], %136 {strides = array<i32>} : memref<3x16x128xf32, #tpu.memory_space<vmem>>, vector<1x16x128xf32>,
    %c0_151 = arith.constant 0 : index
    %c0_152 = arith.constant 0 : index
    %c0_153 = arith.constant 0 : index
    %137 = vector.load %arg7[%c0_151, %c0_152, %c0_153] : memref<3x16x128xf32, #tpu.memory_space<vmem>>, vector<1x16x128xf32>
    %138 = vector.shape_cast %137 : vector<1x16x128xf32> to vector<16x128xf32>
    %c3_154 = arith.constant 3 : index
    %c0_155 = arith.constant 0 : index
    %c0_156 = arith.constant 0 : index
    %139 = vector.load %arg4[%c3_154, %c0_155, %c0_156] : memref<4x128x128xf32, #tpu.memory_space<vmem>>, vector<1x128x128xf32>
    %140 = vector.shape_cast %139 : vector<1x128x128xf32> to vector<128x128xf32>
    %c3_157 = arith.constant 3 : index
    %c0_158 = arith.constant 0 : index
    %c0_159 = arith.constant 0 : index
    %141 = vector.load %arg0[%c3_157, %c0_158, %c0_159] : memref<4x16x16xf32, #tpu.memory_space<vmem>>, vector<1x16x16xf32>
    %142 = vector.shape_cast %141 : vector<1x16x16xf32> to vector<16x16xf32>
    %cst_160 = arith.constant dense<0.000000e+00> : vector<16x128xf32>
    %143 = tpu.matmul %138, %140, %cst_160 {dimension_numbers = #tpu.dot_dimension_numbers<[1], [0], [0], [1], [0, 0, 1, 1], [], []>} : vector<16x128xf32>, vector<128x128xf32>, vector<16x128xf32> -> vector<16x128xf32>
    %c3_161 = arith.constant 3 : index
    %c0_162 = arith.constant 0 : index
    %c0_163 = arith.constant 0 : index
    %144 = vector.load %arg5[%c3_161, %c0_162, %c0_163] : memref<4x1x128xf32, #tpu.memory_space<vmem>>, vector<1x1x128xf32>
    %145 = vector.shape_cast %144 : vector<1x1x128xf32> to vector<1x128xf32>
    %146 = vector.broadcast %145 : vector<1x128xf32> to vector<16x128xf32>
    %147 = arith.addf %143, %146 : vector<16x128xf32>
    %c2_164 = arith.constant 2 : index
    %c0_165 = arith.constant 0 : index
    %c0_166 = arith.constant 0 : index
    %148 = vector.load %arg6[%c2_164, %c0_165, %c0_166] : memref<3x16x128xf32, #tpu.memory_space<vmem>>, vector<1x16x128xf32>
    %149 = vector.shape_cast %148 : vector<1x16x128xf32> to vector<16x128xf32>
    %cst_167 = arith.constant dense<0.000000e+00> : vector<16x128xf32>
    %150 = tpu.matmul %142, %147, %cst_167 {dimension_numbers = #tpu.dot_dimension_numbers<[1], [0], [0], [1], [0, 0, 1, 1], [], []>} : vector<16x16xf32>, vector<16x128xf32>, vector<16x128xf32> -> vector<16x128xf32>
    %151 = arith.addf %149, %150 : vector<16x128xf32>
    %c2_168 = arith.constant 2 : index
    %c0_169 = arith.constant 0 : index
    %c0_170 = arith.constant 0 : index
    %152 = vector.load %arg6[%c2_168, %c0_169, %c0_170] : memref<3x16x128xf32, #tpu.memory_space<vmem>>, vector<1x16x128xf32>
    %153 = vector.shape_cast %152 : vector<1x16x128xf32> to vector<16x128xf32>
    %154 = vector.shape_cast %151 : vector<16x128xf32> to vector<1x16x128xf32>
    tpu.vector_store %arg6[%c2_168, %c0_169, %c0_170], %154 {strides = array<i32>} : memref<3x16x128xf32, #tpu.memory_space<vmem>>, vector<1x16x128xf32>,
    return
  }
}

</mosaic_0001>

<bundles_post_ra>
// kernel: tpu_custom_call.1
= control target key start
LH: loop header
LB: loop body
LE: loop exit
PB: predicated region body
PF: predicated region fallthrough
CT: control target
= control target key end

     0   :  { %11 = vsyncpa [#allocation4], 0  ;;  %s1201_s0 = inlined_call_operand.hbm [shape: f32[4,16,16], index: 0, kind: input, shape index: {}]   ;;  %s1202_s1 = inlined_call_operand.hbm [shape: f32[3,16,128], index: 1, kind: input, shape index: {}]   ;;  %s1203_s2 = inlined_call_operand.hbm [shape: f32[4,128,128], index: 2, kind: input, shape index: {}]   ;;  %s1204_s3 = inlined_call_operand.hbm [shape: f32[4,1,128], index: 3, kind: input, shape index: {}]   ;;  %s1205_s4 = inlined_call_operand.hbm [shape: f32[4,128,128], index: 4, kind: input, shape index: {}]   ;;  %s1206_s5 = inlined_call_operand.vmem [shape: f32[4,1,128], index: 5, kind: input, shape index: {}]   ;;  %s1207_s6 = inlined_call_operand.hbm [shape: f32[3,16,128], index: 6, kind: output, shape index: {}]  }
   0x1   :  { %12 = vsyncpa [#allocation7], 0 }
   0x2   :  { %13 = vsyncpa [#allocation10], 0 }
   0x3   :  { %14 = vsyncpa [#allocation5], 0  ;;  %s32_s23 = sshll.u32 %s1202_s1, 4  ;;  %s1037_s24 = smov [#allocation6]   ;;  %s33_s23 = int_to_ptr.hbm [resolvable:$true] %s32_s23 }
   0x4   :  { %s34_s25 = sshll.u32 %s1037_s24, 4  ;;  %s58_s28 = sshll.u32 %s1204_s3, 4  ;;  %s35_s25 = int_to_ptr.vmem [resolvable:$true] %s34_s25  ;;  %s59_s28 = int_to_ptr.hbm [resolvable:$true] %s58_s28 }
   0x5   :  { %s1038_s29 = smov 128   ;;  %s1039_s30 = smov 8  }
   0x6   :  { %40 = dma.hbm_to_vmem [thread:$0]  %s33_s23, 768, %s35_s25, [#allocation7], %s1038_s29, %s1038_s29, %s1039_s30  }
   0x7   :  { %s1040_s7 = smov [#allocation9]   ;;  %s1041_s9 = smov 16  }
   0x8   :  { %s60_s8 = sshll.u32 %s1040_s7, 4  ;;  %s1042_s1 = smov 1   ;;  %s61_s8 = int_to_ptr.vmem [resolvable:$true] %s60_s8 }
   0x9   :  { %66 = dma.hbm_to_vmem [thread:$0]  %s59_s28, 64, %s61_s8, [#allocation10], %s1041_s9, %s1041_s9, %s1042_s1  }
   0xa   :  { %s19_s12 = sshll.u32 %s1201_s0, 4  ;;  %s1043_s13 = smov [#allocation3]   ;;  %s20_s12 = int_to_ptr.hbm [resolvable:$true] %s19_s12 }
   0xb   :  { %s21_s3 = sshll.u32 %s1043_s13, 4  ;;  %s45_s16 = sshll.u32 %s1203_s2, 4  ;;  %s22_s3 = int_to_ptr.vmem [resolvable:$true] %s21_s3  ;;  %s46_s16 = int_to_ptr.hbm [resolvable:$true] %s45_s16 }
   0xc   :  { %27 = dma.hbm_to_vmem [thread:$0]  %s20_s12, 1024, %s22_s3, [#allocation4], %s1038_s29, %s1038_s29, %s1039_s30  }
   0xd   :  { %s1044_s17 = smov [#allocation8]   ;;  %s71_s21 = sshll.u32 %s1205_s4, 4  ;;  %s72_s21 = int_to_ptr.hbm [resolvable:$true] %s71_s21 }
   0xe   :  { %s47_s18 = sshll.u32 %s1044_s17, 4  ;;  %s1045_s0 = smov [#allocation11]   ;;  %s48_s18 = int_to_ptr.vmem [resolvable:$true] %s47_s18 }
   0xf   :  { %53 = dma.hbm_to_vmem [thread:$0]  %s46_s16, 8192, %s48_s18, [#allocation7], %s1038_s29, %s1038_s29, %s1039_s30  }
  0x10   :  { %s73_s22 = sshll.u32 %s1045_s0, 4  ;;  %s74_s22 = int_to_ptr.vmem [resolvable:$true] %s73_s22 }
  0x11   :  { %79 = dma.hbm_to_vmem [thread:$0]  %s72_s21, 8192, %s74_s22, [#allocation10], %s1038_s29, %s1038_s29, %s1039_s30  }
  0x12   :  { %1029 = dma.done.wait [#allocation4], 1024  }
  0x13   :  { %1030 = vsyncadd [#allocation4], 4294966272 }
  0x14   :  { %1031 = dma.done.wait [#allocation7], 8960  }
  0x15   :  { %1032 = vsyncadd [#allocation7], 4294958336 }
  0x16   :  { %1033 = dma.done.wait [#allocation10], 8256  }
  0x17   :  { %1034 = vsyncadd [#allocation10], 4294959040  ;;  %v125_v0 = vld [vmem:[#allocation8 + $0x78] sm:$0xff]  ;;  %v124_v1 = vld [vmem:[#allocation8 + $0x70] sm:$0xff]  ;;  %vm158_vm0 = vcmask 130048   ;;  %s828_s1 = sshll.u32 %s1207_s6, 4  ;;  %s829_s1 = int_to_ptr.hbm [resolvable:$true] %s828_s1 }
  0x18   :  { %132 = vmatpush.msra.mxu0 %v125_v0  ;;  %v123_v2 = vld [vmem:[#allocation8 + $0x68] sm:$0xff]  ;;  %v122_v3 = vld [vmem:[#allocation8 + $0x60] sm:$0xff]  ;;  %v121_v4 = vld [vmem:[#allocation8 + $0x58] sm:$0xff] }
  0x19   :  { %v120_v5 = vld [vmem:[#allocation8 + $0x50] sm:$0xff]  ;;  %v211_v6 = vld [vmem:[#allocation8 + $0xf8] sm:$0xff]  ;;  %v119_v8 = vld [vmem:[#allocation8 + $0x48] sm:$0xff] }
  0x1a   :  { %133 = vmatpush.msra.mxu0 %v124_v1  ;;  %v210_v7 = vld [vmem:[#allocation8 + $0xf0] sm:$0xff]  ;;  %220 = vmatpush.msra.mxu2 %v211_v6  ;;  %v209_v9 = vld [vmem:[#allocation8 + $0xe8] sm:$0xff]  ;;  %v118_v10 = vld [vmem:[#allocation8 + $0x40] sm:$0xff] }
  0x1b   :  { %v208_v11 = vld [vmem:[#allocation8 + $0xe0] sm:$0xff]  ;;  %v117_v12 = vld [vmem:[#allocation8 + $0x38] sm:$0xff]  ;;  %v116_v13 = vld [vmem:[#allocation8 + $0x30] sm:$0xff] }
  0x1c   :  { %134 = vmatpush.msra.mxu0 %v123_v2  ;;  %221 = vmatpush.msra.mxu2 %v210_v7  ;;  %v115_v14 = vld [vmem:[#allocation8 + $0x28] sm:$0xff]  ;;  %v114_v15 = vld [vmem:[#allocation8 + $0x20] sm:$0xff]  ;;  %v113_v16 = vld [vmem:[#allocation8 + $0x18] sm:$0xff] }
  0x1d   :  { %v112_v17 = vld [vmem:[#allocation8 + $0x10] sm:$0xff]  ;;  %v111_v18 = vld [vmem:[#allocation8 + $0x8] sm:$0xff]  ;;  %v110_v19 = vld [vmem:[#allocation8] sm:$0xff] }
  0x1e   :  { %135 = vmatpush.msra.mxu0 %v122_v3  ;;  %222 = vmatpush.msra.mxu2 %v209_v9  ;;  %v1109_v20 = vld [vmem:[#allocation6] sm:$0xff]  ;;  %v1112_v21 = vld [vmem:[#allocation6 + $0x8] sm:$0xff]  ;;  %v205_v24 = vld [vmem:[#allocation8 + $0xc8] sm:$0xff] }
  0x1f   :  { %v207_v22 = vld [vmem:[#allocation8 + $0xd8] sm:$0xff]  ;;  %v206_v23 = vld [vmem:[#allocation8 + $0xd0] sm:$0xff]  ;;  %v204_v25 = vld [vmem:[#allocation8 + $0xc0] sm:$0xff] }
  0x20   :  { %136 = vmatpush.msra.mxu0 %v121_v4  ;;  %223 = vmatpush.msra.mxu2 %v208_v11  ;;  %v203_v26 = vld [vmem:[#allocation8 + $0xb8] sm:$0xff]  ;;  %v202_v27 = vld [vmem:[#allocation8 + $0xb0] sm:$0xff]  ;;  %v201_v28 = vld [vmem:[#allocation8 + $0xa8] sm:$0xff] }
  0x21   :  { %v200_v29 = vld [vmem:[#allocation8 + $0xa0] sm:$0xff]  ;;  %v199_v30 = vld [vmem:[#allocation8 + $0x98] sm:$0xff]  ;;  %v198_v31 = vld [vmem:[#allocation8 + $0x90] sm:$0xff] }
  0x22   :  { %137 = vmatpush.msra.mxu0 %v120_v5  ;;  %224 = vmatpush.msra.mxu2 %v207_v22  ;;  %v197_v32 = vld [vmem:[#allocation8 + $0x88] sm:$0xff]  ;;  %v196_v33 = vld [vmem:[#allocation8 + $0x80] sm:$0xff]  ;;  %v297_v41 = vld [vmem:[#allocation8 + $0x178] sm:$0xff] }
  0x23   :  { %v193_v34 = vld [vmem:[#allocation6 + $0x10] sm:$0xff]  ;;  %v194_v35 = vld [vmem:[#allocation6 + $0x18] sm:$0xff]  ;;  %v1115_v42 = vld [vmem:[#allocation3] sm:$0xff] }
  0x24   :  { %138 = vmatpush.msra.mxu0 %v119_v8  ;;  %225 = vmatpush.msra.mxu2 %v206_v23  ;;  %v877_v37 = vld [vmem:[#allocation9] ss:$0 sm:$0xff]  ;;  %v296_v43 = vld [vmem:[#allocation8 + $0x170] sm:$0xff]  ;;  %v295_v44 = vld [vmem:[#allocation8 + $0x168] sm:$0xff] }
  0x25   :  { %v294_v45 = vld [vmem:[#allocation8 + $0x160] sm:$0xff]  ;;  %v293_v46 = vld [vmem:[#allocation8 + $0x158] sm:$0xff]  ;;  %v292_v48 = vld [vmem:[#allocation8 + $0x150] sm:$0xff] }
  0x26   :  { %139 = vmatpush.msra.mxu0 %v118_v10  ;;  %226 = vmatpush.msra.mxu2 %v205_v24  ;;  %v1119_v47 = vld [vmem:[#allocation3 + $0x8] sm:$0xff]  ;;  %v291_v49 = vld [vmem:[#allocation8 + $0x148] sm:$0xff]  ;;  %v290_v50 = vld [vmem:[#allocation8 + $0x140] sm:$0xff] }
  0x27   :  { %v289_v51 = vld [vmem:[#allocation8 + $0x138] sm:$0xff]  ;;  %v288_v52 = vld [vmem:[#allocation8 + $0x130] sm:$0xff]  ;;  %v287_v53 = vld [vmem:[#allocation8 + $0x128] sm:$0xff] }
  0x28   :  { %140 = vmatpush.msra.mxu0 %v117_v12  ;;  %227 = vmatpush.msra.mxu2 %v204_v25  ;;  %v286_v54 = vld [vmem:[#allocation8 + $0x120] sm:$0xff]  ;;  %v285_v55 = vld [vmem:[#allocation8 + $0x118] sm:$0xff]  ;;  %v284_v56 = vld [vmem:[#allocation8 + $0x110] sm:$0xff] }
  0x29   :  { %v283_v57 = vld [vmem:[#allocation8 + $0x108] sm:$0xff]  ;;  %v282_v58 = vld [vmem:[#allocation8 + $0x100] sm:$0xff]  ;;  %v279_v59 = vld [vmem:[#allocation6 + $0x20] sm:$0xff] }
  0x2a   :  { %141 = vmatpush.msra.mxu0 %v116_v13  ;;  %228 = vmatpush.msra.mxu2 %v203_v26  ;;  %v280_v60 = vld [vmem:[#allocation6 + $0x28] sm:$0xff]  ;;  %v878_v62 = vld [vmem:[#allocation9 + $0x1] ss:$0 sm:$0xff]  ;;  %v1127_v3 = vld [vmem:[#allocation3 + $0x18] sm:$0xff] }
  0x2b   :  { %v1123_v2 = vld [vmem:[#allocation3 + $0x10] sm:$0xff]  ;;  %v1135_v11 = vld [vmem:[#allocation3 + $0x20] sm:$0xff]  ;;  %v382_v12 = vld [vmem:[#allocation8 + $0x1f8] sm:$0xff] }
  0x2c   :  { %142 = vmatpush.msra.mxu0 %v115_v14  ;;  %229 = vmatpush.msra.mxu2 %v202_v27  ;;  %v879_v7 = vld [vmem:[#allocation9 + $0x2] ss:$0 sm:$0xff]  ;;  %v381_v13 = vld [vmem:[#allocation8 + $0x1f0] sm:$0xff]  ;;  %v380_v14 = vld [vmem:[#allocation8 + $0x1e8] sm:$0xff] }
  0x2d   :  { %v502_v22 = vld [vmem:[#allocation11 + $0x70] sm:$0xff]  ;;  %v376_v23 = vld [vmem:[#allocation8 + $0x1c8] sm:$0xff]  ;;  %v375_v25 = vld [vmem:[#allocation8 + $0x1c0] sm:$0xff] }
  0x2e   :  { %143 = vmatpush.msra.mxu0 %v114_v15  ;;  %230 = vmatpush.msra.mxu2 %v201_v28  ;;  %v379_v15 = vld [vmem:[#allocation8 + $0x1e0] sm:$0xff]  ;;  %v501_v24 = vld [vmem:[#allocation11 + $0x68] sm:$0xff]  ;;  %v374_v27 = vld [vmem:[#allocation8 + $0x1b8] sm:$0xff] }
  0x2f   :  { %v500_v26 = vld [vmem:[#allocation11 + $0x60] sm:$0xff]  ;;  %v499_v28 = vld [vmem:[#allocation11 + $0x58] sm:$0xff] }
  0x30   :  { %144 = vmatpush.msra.mxu0 %v113_v16  ;;  %231 = vmatpush.msra.mxu2 %v200_v29  ;;  %v1139_v16 = vld [vmem:[#allocation3 + $0x28] sm:$0xff]  ;;  %v373_v29 = vld [vmem:[#allocation8 + $0x1b0] sm:$0xff] }
  0x32   :  { %145 = vmatpush.msra.mxu0 %v112_v17  ;;  %232 = vmatpush.msra.mxu2 %v199_v30  ;;  %v378_v17 = vld [vmem:[#allocation8 + $0x1d8] sm:$0xff]  ;;  %v372_v30 = vld [vmem:[#allocation8 + $0x1a8] sm:$0xff] }
  0x34   :  { %146 = vmatpush.msra.mxu0 %v111_v18  ;;  %233 = vmatpush.msra.mxu2 %v198_v31  ;;  %v377_v18 = vld [vmem:[#allocation8 + $0x1d0] sm:$0xff]  ;;  %v371_v31 = vld [vmem:[#allocation8 + $0x1a0] sm:$0xff] }
  0x36   :  { %147 = vmatpush.msra.mxu0 %v110_v19  ;;  %234 = vmatpush.msra.mxu2 %v197_v32  ;;  %v503_v19 = vld [vmem:[#allocation11 + $0x78] sm:$0xff] }
  0x37   :  { %148 = vmatmul.f32.vlgmr.msra.gmra.mxu0 %v1109_v20  ;;  %v370_v32 = vld [vmem:[#allocation8 + $0x198] sm:$0xff] }
  0x38   :  { %235 = vmatpush.msra.mxu2 %v196_v33  ;;  %v369_v33 = vld [vmem:[#allocation8 + $0x190] sm:$0xff] }
  0x39   :  { %236 = vmatmul.f32.vlgmr.msra.gmra.mxu2 %v193_v34  ;;  %v368_v34 = vld [vmem:[#allocation8 + $0x188] sm:$0xff] }
  0x3a   :  { %510 = vmatpush.msrb.mxu2 %v503_v19  ;;  %v574_v19 = vld [vmem:[#allocation11 + $0x90] sm:$0xff] }
  0x3c   :  { %511 = vmatpush.msrb.mxu2 %v502_v22  ;;  %v573_v22 = vld [vmem:[#allocation11 + $0x88] sm:$0xff] }
  0x3e   :  { %512 = vmatpush.msrb.mxu2 %v501_v24  ;;  %v572_v24 = vld [vmem:[#allocation11 + $0x80] sm:$0xff] }
  0x3f   :  { %151 = vmatmul.f32.gmra.mxu0 %v1112_v21 }
  0x40   :  { %513 = vmatpush.msrb.mxu2 %v500_v26 }
  0x41   :  { %239 = vmatmul.f32.gmra.mxu2 %v194_v35  ;;  %v367_v35 = vld [vmem:[#allocation8 + $0x180] sm:$0xff] }
  0x42   :  { %514 = vmatpush.msrb.mxu2 %v499_v28  ;;  %v671_v28 = vld [vmem:[#allocation11 + $0x178] sm:$0xff] }
  0xb4   :  { %v149_v36 = vpop.f32.mrf.mxu0 }
  0xb5   :  { %v150_v40 = vadd.f32 %v877_v37, %v149_v36  ;;  %v498_v36 = vld [vmem:[#allocation11 + $0x50] sm:$0xff] }
  0xb6   :  { %515 = vmatpush.msrb.mxu2 %v498_v36  ;;  %v662_v36 = vld [vmem:[#allocation11 + $0x130] sm:$0xff] }
  0xbc   :  { %v152_v38 = vpop.f32.mrf.mxu0  ;;  %v237_v61 = vpop.f32.mrf.mxu2 }
  0xbd   :  { %v153_v39 = vadd.f32 %v877_v37, %v152_v38  ;;  %v238_v0 = vadd.f32 %v878_v62, %v237_v61  ;;  %v497_v37 = vld [vmem:[#allocation11 + $0x48] sm:$0xff]  ;;  %v496_v38 = vld [vmem:[#allocation11 + $0x40] sm:$0xff] }
  0xbe   :  { %516 = vmatpush.msrb.mxu2 %v497_v37  ;;  %v660_v37 = vld [vmem:[#allocation11 + $0x120] sm:$0xff] }
  0xbf   :  { %179 = vmatpush.msra.mxu1 %v153_v39  ;;  %v495_v39 = vld [vmem:[#allocation11 + $0x38] sm:$0xff] }
  0xc0   :  { %517 = vmatpush.msrb.mxu2 %v496_v38  ;;  %v659_v38 = vld [vmem:[#allocation11 + $0x118] sm:$0xff] }
  0xc1   :  { %180 = vmatpush.msra.mxu1 %v150_v40  ;;  %v494_v40 = vld [vmem:[#allocation11 + $0x30] sm:$0xff] }
  0xc2   :  { %843 = vmatmul.msk.f32.vlgmr.msra.gmra.mxu1 %vm158_vm0, %v1115_v42  ;;  %518 = vmatpush.msrb.mxu2 %v495_v39  ;;  %v658_v39 = vld [vmem:[#allocation11 + $0x110] sm:$0xff] }
  0xc3   :  { %306 = vmatpush.msrb.mxu1 %v297_v41  ;;  %v493_v41 = vld [vmem:[#allocation11 + $0x28] sm:$0xff] }
  0xc4   :  { %v240_v63 = vpop.f32.mrf.mxu2  ;;  %519 = vmatpush.msrb.mxu2 %v494_v40 }
  0xc5   :  { %307 = vmatpush.msrb.mxu1 %v296_v43  ;;  %v241_v1 = vadd.f32 %v878_v62, %v240_v63  ;;  %v492_v43 = vld [vmem:[#allocation11 + $0x20] sm:$0xff]  ;;  %v587_v63 = vld [vmem:[#allocation11 + $0xf8] sm:$0xff] }
  0xc6   :  { %520 = vmatpush.msrb.mxu2 %v493_v41  ;;  %v1151_v62 = vld [vmem:[#allocation3 + $0x30] sm:$0xff]  ;;  %v657_v41 = vld [vmem:[#allocation11 + $0x108] sm:$0xff] }
  0xc7   :  { %308 = vmatpush.msrb.mxu1 %v295_v44  ;;  %265 = vmatpush.msra.mxu3 %v241_v1  ;;  %v491_v44 = vld [vmem:[#allocation11 + $0x18] sm:$0xff]  ;;  %v585_v1 = vld [vmem:[#allocation11 + $0xe8] sm:$0xff] }
  0xc8   :  { %521 = vmatpush.msrb.mxu2 %v492_v43  ;;  %v656_v43 = vld [vmem:[#allocation11 + $0x100] sm:$0xff] }
  0xc9   :  { %309 = vmatpush.msrb.mxu1 %v294_v45  ;;  %266 = vmatpush.msra.mxu3 %v238_v0  ;;  %v490_v45 = vld [vmem:[#allocation11 + $0x10] sm:$0xff] }
  0xca   :  { %844 = vmatmul.msk.f32.gmra.mxu1 %vm158_vm0, %v1119_v47  ;;  %845 = vmatmul.msk.f32.vlgmr.msra.gmra.mxu3 %vm158_vm0, %v1123_v2  ;;  %v586_v0 = vld [vmem:[#allocation11 + $0xf0] sm:$0xff] }
  0xcb   :  { %310 = vmatpush.msrb.mxu1 %v293_v46  ;;  %522 = vmatpush.msrb.mxu2 %v491_v44  ;;  %v881_v44 = vld [vmem:[%s1206_s5] ss:$0 sm:$0xff] }
  0xcd   :  { %311 = vmatpush.msrb.mxu1 %v292_v48  ;;  %523 = vmatpush.msrb.mxu2 %v490_v45 }
  0xcf   :  { %312 = vmatpush.msrb.mxu1 %v291_v49 }
  0xd1   :  { %313 = vmatpush.msrb.mxu1 %v290_v50 }
  0xd2   :  { %846 = vmatmul.msk.f32.gmra.mxu3 %vm158_vm0, %v1127_v3 }
  0xd3   :  { %314 = vmatpush.msrb.mxu1 %v289_v51 }
  0xd5   :  { %315 = vmatpush.msrb.mxu1 %v288_v52 }
  0xd7   :  { %316 = vmatpush.msrb.mxu1 %v287_v53 }
  0xd9   :  { %317 = vmatpush.msrb.mxu1 %v286_v54 }
  0xdb   :  { %318 = vmatpush.msrb.mxu1 %v285_v55 }
  0xdd   :  { %319 = vmatpush.msrb.mxu1 %v284_v56 }
  0xdf   :  { %320 = vmatpush.msrb.mxu1 %v283_v57 }
  0xe1   :  { %321 = vmatpush.msrb.mxu1 %v282_v58  ;;  %v880_v58 = vld [vmem:[#allocation9 + $0x3] ss:$0 sm:$0xff] }
  0xe2   :  { %322 = vmatmul.f32.vlgmr.msrb.gmra.mxu1 %v279_v59 }
  0xea   :  { %325 = vmatmul.f32.gmra.mxu1 %v280_v60 }
 0x13f   :  { %v1131_v4 = vpop.f32.mrf.mxu1 }
 0x140   :  { %vm458_vm3 = vcmp.ge.f32.partialorder %v1131_v4, 0.0 }
 0x147   :  { %v1133_v5 = vpop.f32.mrf.mxu1 }
 0x148   :  { %v465_v26 = vmul.f32 0.01, %v1133_v5  ;;  %vm459_vm4 = vcmp.ge.f32.partialorder %v1133_v5, 0.0 }
 0x14d   :  { %v268_v46 = vpop.f32.mrf.mxu3 }
 0x155   :  { %v271_v48 = vpop.f32.mrf.mxu3 }
 0x15f   :  { %v323_v6 = vpop.f32.mrf.mxu1 }
 0x160   :  { %v324_v10 = vadd.f32 %v879_v7, %v323_v6  ;;  %v584_v6 = vld [vmem:[#allocation11 + $0xe0] sm:$0xff] }
 0x167   :  { %v326_v8 = vpop.f32.mrf.mxu1 }
 0x168   :  { %v327_v9 = vadd.f32 %v879_v7, %v326_v8  ;;  %v1155_v7 = vld [vmem:[#allocation3 + $0x38] sm:$0xff]  ;;  %v583_v8 = vld [vmem:[#allocation11 + $0xd8] sm:$0xff] }
 0x16a   :  { %351 = vmatpush.msrb.mxu3 %v327_v9  ;;  %v582_v9 = vld [vmem:[#allocation11 + $0xd0] sm:$0xff] }
 0x16c   :  { %352 = vmatpush.msrb.mxu3 %v324_v10  ;;  %v581_v10 = vld [vmem:[#allocation11 + $0xc8] sm:$0xff] }
 0x16d   :  { %847 = vmatmul.msk.f32.vlgmr.msrb.gmra.mxu3 %vm158_vm0, %v1135_v11 }
 0x16e   :  { %391 = vmatpush.msra.mxu3 %v382_v12  ;;  %v580_v12 = vld [vmem:[#allocation11 + $0xc0] sm:$0xff] }
 0x170   :  { %392 = vmatpush.msra.mxu3 %v381_v13  ;;  %v579_v13 = vld [vmem:[#allocation11 + $0xb8] sm:$0xff] }
 0x172   :  { %393 = vmatpush.msra.mxu3 %v380_v14  ;;  %v578_v14 = vld [vmem:[#allocation11 + $0xb0] sm:$0xff] }
 0x174   :  { %394 = vmatpush.msra.mxu3 %v379_v15  ;;  %v577_v15 = vld [vmem:[#allocation11 + $0xa8] sm:$0xff] }
 0x175   :  { %848 = vmatmul.msk.f32.gmra.mxu3 %vm158_vm0, %v1139_v16 }
 0x176   :  { %395 = vmatpush.msra.mxu3 %v378_v17  ;;  %v576_v17 = vld [vmem:[#allocation11 + $0xa0] sm:$0xff] }
 0x178   :  { %396 = vmatpush.msra.mxu3 %v377_v18  ;;  %v575_v18 = vld [vmem:[#allocation11 + $0x98] sm:$0xff] }
 0x17a   :  { %397 = vmatpush.msra.mxu3 %v376_v23  ;;  %v464_v23 = vmul.f32 0.01, %v1131_v4 }
 0x17c   :  { %398 = vmatpush.msra.mxu3 %v375_v25  ;;  %v470_v25 = vsel %vm458_vm3, %v1131_v4, %v464_v23  ;;  %v665_v4 = vld [vmem:[#allocation11 + $0x148] sm:$0xff] }
 0x17e   :  { %399 = vmatpush.msra.mxu3 %v374_v27  ;;  %v471_v27 = vsel %vm459_vm4, %v1133_v5, %v465_v26  ;;  %v661_v5 = vld [vmem:[#allocation11 + $0x128] sm:$0xff] }
 0x17f   :  { %v884_v26 = vld [vmem:[%s1206_s5 + $0x3] ss:$0 sm:$0xff] }
 0x180   :  { %400 = vmatpush.msra.mxu3 %v373_v29  ;;  %v670_v29 = vld [vmem:[#allocation11 + $0x170] sm:$0xff] }
 0x182   :  { %401 = vmatpush.msra.mxu3 %v372_v30  ;;  %v669_v30 = vld [vmem:[#allocation11 + $0x168] sm:$0xff] }
 0x184   :  { %402 = vmatpush.msra.mxu3 %v371_v31  ;;  %v668_v31 = vld [vmem:[#allocation11 + $0x160] sm:$0xff] }
 0x186   :  { %403 = vmatpush.msra.mxu3 %v370_v32  ;;  %v667_v32 = vld [vmem:[#allocation11 + $0x158] sm:$0xff] }
 0x188   :  { %404 = vmatpush.msra.mxu3 %v369_v33  ;;  %v666_v33 = vld [vmem:[#allocation11 + $0x150] sm:$0xff] }
 0x18a   :  { %405 = vmatpush.msra.mxu3 %v368_v34  ;;  %v664_v34 = vld [vmem:[#allocation11 + $0x140] sm:$0xff] }
 0x18c   :  { %406 = vmatpush.msra.mxu3 %v367_v35  ;;  %v663_v35 = vld [vmem:[#allocation11 + $0x138] sm:$0xff] }
 0x18d   :  { %407 = vmatmul.f32.vlgmr.msra.gmra.mxu3 %v1109_v20  ;;  %v489_v20 = vld [vmem:[#allocation11 + $0x8] sm:$0xff] }
 0x18e   :  { %524 = vmatpush.msrb.mxu2 %v489_v20  ;;  %679 = vmatpush.msrb.mxu3 %v671_v28 }
 0x190   :  { %680 = vmatpush.msrb.mxu3 %v670_v29 }
 0x192   :  { %681 = vmatpush.msrb.mxu3 %v669_v30 }
 0x194   :  { %682 = vmatpush.msrb.mxu3 %v668_v31 }
 0x195   :  { %410 = vmatmul.f32.gmra.mxu3 %v1112_v21  ;;  %v488_v21 = vld [vmem:[#allocation11] sm:$0xff] }
 0x196   :  { %525 = vmatpush.msrb.mxu2 %v488_v21  ;;  %683 = vmatpush.msrb.mxu3 %v667_v32 }
 0x198   :  { %684 = vmatpush.msrb.mxu3 %v666_v33 }
 0x19a   :  { %685 = vmatpush.msrb.mxu3 %v665_v4 }
 0x19c   :  { %686 = vmatpush.msrb.mxu3 %v664_v34 }
 0x19e   :  { %687 = vmatpush.msrb.mxu3 %v663_v35 }
 0x1a0   :  { %688 = vmatpush.msrb.mxu3 %v662_v36 }
 0x1a2   :  { %689 = vmatpush.msrb.mxu3 %v661_v5 }
 0x1a4   :  { %690 = vmatpush.msrb.mxu3 %v660_v37 }
 0x1a6   :  { %691 = vmatpush.msrb.mxu3 %v659_v38 }
 0x1a8   :  { %692 = vmatpush.msrb.mxu3 %v658_v39 }
 0x1aa   :  { %693 = vmatpush.msrb.mxu3 %v657_v41 }
 0x1ac   :  { %694 = vmatpush.msrb.mxu3 %v656_v43 }
 0x1f0   :  { %v354_v49 = vpop.f32.mrf.mxu3 }
 0x1f1   :  { %v360_v50 = vadd.f32 %v354_v49, %v268_v46 }
 0x1f3   :  { %v462_v51 = vmul.f32 0.01, %v360_v50  ;;  %vm456_vm1 = vcmp.ge.f32.partialorder %v360_v50, 0.0 }
 0x1f5   :  { %v1145_v52 = vsel %vm456_vm1, %v360_v50, %v462_v51 }
 0x1f6   :  { %526 = vmatmul.f32.vlgmr.msrb.gmra.mxu2 %v1145_v52 }
 0x1f8   :  { %v357_v53 = vpop.f32.mrf.mxu3 }
 0x1f9   :  { %v361_v54 = vadd.f32 %v357_v53, %v271_v48 }
 0x1fb   :  { %vm457_vm2 = vcmp.ge.f32.partialorder %v361_v54, 0.0  ;;  %v463_v55 = vmul.f32 0.01, %v361_v54 }
 0x1fd   :  { %v1148_v56 = vsel %vm457_vm2, %v361_v54, %v463_v55  ;;  %v882_v55 = vld [vmem:[%s1206_s5 + $0x1] ss:$0 sm:$0xff] }
 0x1fe   :  { %529 = vmatmul.f32.gmra.mxu2 %v1148_v56 }
 0x210   :  { %v408_v57 = vpop.f32.mrf.mxu3 }
 0x211   :  { %v409_v61 = vadd.f32 %v880_v58, %v408_v57 }
 0x218   :  { %v411_v59 = vpop.f32.mrf.mxu3 }
 0x219   :  { %v412_v60 = vadd.f32 %v880_v58, %v411_v59  ;;  %v754_v59 = vld [vmem:[#allocation11 + $0x1f0] sm:$0xff] }
 0x21b   :  { %437 = vmatpush.msrb.mxu0 %v412_v60  ;;  %v753_v60 = vld [vmem:[#allocation11 + $0x1e8] sm:$0xff] }
 0x21d   :  { %438 = vmatpush.msrb.mxu0 %v409_v61  ;;  %v752_v61 = vld [vmem:[#allocation11 + $0x1e0] sm:$0xff] }
 0x21e   :  { %849 = vmatmul.msk.f32.vlgmr.msrb.gmra.mxu0 %vm158_vm0, %v1151_v62 }
 0x21f   :  { %595 = vmatpush.msra.mxu0 %v587_v63  ;;  %v751_v63 = vld [vmem:[#allocation11 + $0x1d8] sm:$0xff] }
 0x221   :  { %596 = vmatpush.msra.mxu0 %v586_v0  ;;  %v750_v0 = vld [vmem:[#allocation11 + $0x1d0] sm:$0xff] }
 0x223   :  { %597 = vmatpush.msra.mxu0 %v585_v1  ;;  %v749_v1 = vld [vmem:[#allocation11 + $0x1c8] sm:$0xff] }
 0x225   :  { %598 = vmatpush.msra.mxu0 %v584_v6  ;;  %v748_v6 = vld [vmem:[#allocation11 + $0x1c0] sm:$0xff] }
 0x226   :  { %850 = vmatmul.msk.f32.gmra.mxu0 %vm158_vm0, %v1155_v7 }
 0x227   :  { %599 = vmatpush.msra.mxu0 %v583_v8  ;;  %v747_v8 = vld [vmem:[#allocation11 + $0x1b8] sm:$0xff] }
 0x229   :  { %600 = vmatpush.msra.mxu0 %v582_v9  ;;  %v746_v9 = vld [vmem:[#allocation11 + $0x1b0] sm:$0xff] }
 0x22b   :  { %601 = vmatpush.msra.mxu0 %v581_v10  ;;  %v745_v10 = vld [vmem:[#allocation11 + $0x1a8] sm:$0xff] }
 0x22d   :  { %602 = vmatpush.msra.mxu0 %v580_v12  ;;  %v743_v12 = vld [vmem:[#allocation11 + $0x198] sm:$0xff] }
 0x22f   :  { %603 = vmatpush.msra.mxu0 %v579_v13  ;;  %v742_v13 = vld [vmem:[#allocation11 + $0x190] sm:$0xff] }
 0x231   :  { %604 = vmatpush.msra.mxu0 %v578_v14  ;;  %v741_v14 = vld [vmem:[#allocation11 + $0x188] sm:$0xff] }
 0x233   :  { %605 = vmatpush.msra.mxu0 %v577_v15  ;;  %v740_v15 = vld [vmem:[#allocation11 + $0x180] sm:$0xff] }
 0x235   :  { %606 = vmatpush.msra.mxu0 %v576_v17 }
 0x237   :  { %607 = vmatpush.msra.mxu0 %v575_v18  ;;  %v883_v18 = vld [vmem:[%s1206_s5 + $0x2] ss:$0 sm:$0xff]  ;;  %s1046_s5 = smov [#allocation12]  }
 0x238   :  { %s826_s7 = sshll.u32 %s1046_s5, 4  ;;  %s827_s7 = int_to_ptr.vmem [resolvable:$true] %s826_s7 }
 0x239   :  { %608 = vmatpush.msra.mxu0 %v574_v19 }
 0x23b   :  { %609 = vmatpush.msra.mxu0 %v573_v22 }
 0x23d   :  { %610 = vmatpush.msra.mxu0 %v572_v24 }
 0x23e   :  { %611 = vmatmul.f32.vlgmr.msra.gmra.mxu0 %v470_v25 }
 0x246   :  { %614 = vmatmul.f32.gmra.mxu0 %v471_v27 }
 0x279   :  { %v527_v40 = vpop.f32.mrf.mxu2 }
 0x27a   :  { %v528_v21 = vadd.f32 %v881_v44, %v527_v40 }
 0x281   :  { %v530_v45 = vpop.f32.mrf.mxu2 }
 0x282   :  { %v531_v20 = vadd.f32 %v881_v44, %v530_v45 }
 0x284   :  { %556 = vmatpush.msra.mxu1 %v531_v20  ;;  %862 = vmatpush.msra.mxu2 %v531_v20 }
 0x286   :  { %557 = vmatpush.msra.mxu1 %v528_v21  ;;  %863 = vmatpush.msra.mxu2 %v528_v21 }
 0x287   :  { %851 = vmatmul.msk.f32.vlgmr.msra.gmra.mxu1 %vm158_vm0, %v1115_v42  ;;  %852 = vmatmul.msk.f32.vlgmr.msra.gmra.mxu2 %vm158_vm0, %v1119_v47  ;;  %v755_v47 = vld [vmem:[#allocation11 + $0x1f8] sm:$0xff] }
 0x29b   :  { %v440_v46 = vpop.f32.mrf.mxu0 }
 0x29c   :  { %vm460_vm5 = vcmp.ge.f32.partialorder %v440_v46, 0.0  ;;  %v466_v48 = vmul.f32 0.01, %v440_v46 }
 0x29e   :  { %v472_v49 = vsel %vm460_vm5, %v440_v46, %v466_v48 }
 0x29f   :  { %695 = vmatmul.f32.vlgmr.msrb.gmra.mxu3 %v472_v49 }
 0x2a3   :  { %v443_v50 = vpop.f32.mrf.mxu0 }
 0x2a4   :  { %v467_v51 = vmul.f32 0.01, %v443_v50  ;;  %vm461_vm6 = vcmp.ge.f32.partialorder %v443_v50, 0.0 }
 0x2a6   :  { %v473_v53 = vsel %vm461_vm6, %v443_v50, %v467_v51 }
 0x2a7   :  { %698 = vmatmul.f32.gmra.mxu3 %v473_v53 }
 0x2bb   :  { %v612_v54 = vpop.f32.mrf.mxu0 }
 0x2bc   :  { %v613_v58 = vadd.f32 %v882_v55, %v612_v54 }
 0x2c3   :  { %v615_v57 = vpop.f32.mrf.mxu0 }
 0x2c4   :  { %v616_v42 = vadd.f32 %v882_v55, %v615_v57 }
 0x2c6   :  { %640 = vmatpush.msrb.mxu1 %v616_v42 }
 0x2c8   :  { %641 = vmatpush.msrb.mxu1 %v613_v58 }
 0x2c9   :  { %854 = vmatmul.msk.f32.vlgmr.msrb.gmra.mxu1 %vm158_vm0, %v1123_v2  ;;  %v744_v2 = vld [vmem:[#allocation11 + $0x1a0] sm:$0xff] }
 0x2ca   :  { %763 = vmatpush.msra.mxu1 %v755_v47 }
 0x2cc   :  { %764 = vmatpush.msra.mxu1 %v754_v59 }
 0x2ce   :  { %765 = vmatpush.msra.mxu1 %v753_v60 }
 0x2d0   :  { %766 = vmatpush.msra.mxu1 %v752_v61 }
 0x2d1   :  { %855 = vmatmul.msk.f32.gmra.mxu1 %vm158_vm0, %v1127_v3 }
 0x2d2   :  { %767 = vmatpush.msra.mxu1 %v751_v63 }
 0x2d4   :  { %768 = vmatpush.msra.mxu1 %v750_v0 }
 0x2d6   :  { %769 = vmatpush.msra.mxu1 %v749_v1 }
 0x2d8   :  { %770 = vmatpush.msra.mxu1 %v748_v6 }
 0x2da   :  { %771 = vmatpush.msra.mxu1 %v747_v8 }
 0x2dc   :  { %772 = vmatpush.msra.mxu1 %v746_v9 }
 0x2de   :  { %773 = vmatpush.msra.mxu1 %v745_v10 }
 0x2e0   :  { %774 = vmatpush.msra.mxu1 %v744_v2 }
 0x2e2   :  { %775 = vmatpush.msra.mxu1 %v743_v12 }
 0x2e4   :  { %776 = vmatpush.msra.mxu1 %v742_v13 }
 0x2e6   :  { %777 = vmatpush.msra.mxu1 %v741_v14 }
 0x2e8   :  { %778 = vmatpush.msra.mxu1 %v740_v15 }
 0x2e9   :  { %779 = vmatmul.f32.vlgmr.msra.gmra.mxu1 %v1145_v52 }
 0x2f1   :  { %782 = vmatmul.f32.gmra.mxu1 %v1148_v56 }
 0x304   :  { %v559_v3 = vpop.f32.mrf.mxu1 }
 0x305   :  { %567 = vst [vmem:[#allocation12 + $0x10] sm:$0xff] %v559_v3 }
 0x30a   :  { %v562_v56 = vpop.f32.mrf.mxu2 }
 0x30b   :  { %568 = vst [vmem:[#allocation12 + $0x18] sm:$0xff] %v562_v56 }
 0x322   :  { %v696_v17 = vpop.f32.mrf.mxu3 }
 0x323   :  { %v697_v22 = vadd.f32 %v883_v18, %v696_v17 }
 0x32a   :  { %v699_v19 = vpop.f32.mrf.mxu3 }
 0x32b   :  { %v700_v23 = vadd.f32 %v883_v18, %v699_v19 }
 0x32d   :  { %724 = vmatpush.msrb.mxu2 %v700_v23 }
 0x32f   :  { %725 = vmatpush.msrb.mxu2 %v697_v22 }
 0x330   :  { %857 = vmatmul.msk.f32.vlgmr.msrb.gmra.mxu2 %vm158_vm0, %v1135_v11 }
 0x338   :  { %858 = vmatmul.msk.f32.gmra.mxu2 %vm158_vm0, %v1139_v16 }
 0x346   :  { %v643_v52 = vpop.f32.mrf.mxu1 }
 0x34e   :  { %v646_v24 = vpop.f32.mrf.mxu1 }
 0x366   :  { %v780_v25 = vpop.f32.mrf.mxu1 }
 0x367   :  { %v781_v29 = vadd.f32 %v884_v26, %v780_v25 }
 0x36e   :  { %v783_v27 = vpop.f32.mrf.mxu1 }
 0x36f   :  { %v784_v28 = vadd.f32 %v884_v26, %v783_v27 }
 0x371   :  { %809 = vmatpush.msrb.mxu0 %v784_v28  ;;  %864 = vmatpush.msra.mxu3 %v784_v28 }
 0x373   :  { %810 = vmatpush.msrb.mxu0 %v781_v29  ;;  %865 = vmatpush.msra.mxu3 %v781_v29 }
 0x374   :  { %861 = vmatmul.msk.f32.vlgmr.msra.gmra.mxu3 %vm158_vm0, %v1155_v7  ;;  %860 = vmatmul.msk.f32.vlgmr.msrb.gmra.mxu0 %vm158_vm0, %v1151_v62 }
 0x3b3   :  { %v727_v11 = vpop.f32.mrf.mxu2 }
 0x3b4   :  { %v733_v16 = vadd.f32 %v727_v11, %v643_v52 }
 0x3b6   :  { %735 = vst [vmem:[#allocation12] sm:$0xff] %v733_v16 }
 0x3bb   :  { %v730_v30 = vpop.f32.mrf.mxu2 }
 0x3bc   :  { %v734_v31 = vadd.f32 %v730_v30, %v646_v24 }
 0x3be   :  { %736 = vst [vmem:[#allocation12 + $0x8] sm:$0xff] %v734_v31 }
 0x3f1   :  { %v812_v32 = vpop.f32.mrf.mxu0 }
 0x3f2   :  { %820 = vst [vmem:[#allocation12 + $0x20] sm:$0xff] %v812_v32 }
 0x3f7   :  { %v815_v33 = vpop.f32.mrf.mxu3 }
 0x3f8   :  { %821 = vst [vmem:[#allocation12 + $0x28] sm:$0xff] %v815_v33 }
 0x3f9   :  { %834 = dma.vmem_to_hbm [thread:$0]  %s827_s7, 768, %s829_s1, [#allocation5], %s1038_s29, %s1038_s29, %s1039_s30  }
 0x3fa   :  { %1035 = dma.done.wait [#allocation5], 768  }
 0x3fb   :  { %1036 = vsyncadd [#allocation5], 4294966528 }
 0x3fc   :  { %839 = vsyncpa [#allocation4], 1 }
 0x3fd   :  { %840 = vsyncpa [#allocation7], 1 }
 0x3fe   :  { %841 = vsyncpa [#allocation10], 1 }
 0x3ff   :  { %842 = vsyncpa [#allocation5], 1 }

</bundles_post_ra>
